<compile_context>
chip_gen: v7x
topology: tpu7x:2x2x1
jax: 0.10.0
libtpu: 0.0.40
codegen_flags: <defaults>
</compile_context>

<pallas_src>
import functools

import jax
import jax.numpy as jnp
from jax.experimental import pallas as pl
from jax.experimental.pallas import tpu as pltpu


def _round_up(x, m):
    return ((x + m - 1) // m) * m


def _critic_kernel(x_ref, w1_ref, b1_ref, w2_ref, b2_ref, w3_ref, b3_ref, o_ref):
    """Fused 3-layer MLP tile: f32 layer-1, bf16 layer-2 (f32 acc), VPU layer-3."""
    x = x_ref[...]                                                   # (bt, D) f32

    # Layer 1: K = input_dims is tiny, keep f32 operands for parity with torch.
    h1 = jnp.dot(x, w1_ref[...], preferred_element_type=jnp.float32) + b1_ref[...]
    h1 = jnp.maximum(h1, 0.0)                                        # (bt, F1) f32

    # Layer 2: the only big matmul — bf16 MXU operands, f32 accumulation.
    h2 = jnp.dot(h1.astype(jnp.bfloat16), w2_ref[...],
                 preferred_element_type=jnp.float32) + b2_ref[...]
    h2 = jnp.maximum(h2, 0.0)                                        # (bt, F2) f32

    # Layer 3 (output width 1): broadcast multiply + lane reduction on VPU/XLU
    # instead of an MXU matmul against a 128-column zero-padded W3.
    v = jnp.sum(h2 * w3_ref[...], axis=-1, keepdims=True) + b3_ref[...]
    o_ref[...] = v.astype(o_ref.dtype)                               # (bt, 1)


def prepare_params(params):
    """Hoisted once-per-update prep: reshape / cast weights for the kernel."""
    w1, b1, w2, b2, w3, b3 = params
    F1 = w1.shape[1]
    F2 = w2.shape[1]
    return (
        w1.astype(jnp.float32),                   # (D, F1)  f32 (tiny K matmul)
        b1.reshape(1, F1).astype(jnp.float32),    # (1, F1)  f32
        w2.astype(jnp.bfloat16),                  # (F1, F2) bf16 (MXU)
        b2.reshape(1, F2).astype(jnp.float32),    # (1, F2)  f32
        w3.reshape(1, F2).astype(jnp.float32),    # (1, F2)  f32 row (VPU reduce)
        b3.reshape(1, 1).astype(jnp.float32),     # (1, 1)   f32
    )


@functools.partial(jax.jit, static_argnames=("batch_tile",))
def critic_forward(state, prepped, batch_tile=1024):
    """Pallas forward pass of the PPO CriticNetwork.

    state   : (B, input_dims) float32
    prepped : output of prepare_params(params)
    returns (B, 1) float32
    """
    w1, b1, w2, b2, w3r, b3 = prepped
    B, D = state.shape
    F1 = w1.shape[1]
    F2 = w2.shape[1]

    # Batch tile: multiple of 16, never larger than the batch (so block_shape
    # never exceeds the array); ragged last tiles are handled by Pallas.
    if B >= 16:
        bt = min(batch_tile, (B // 16) * 16)
    else:
        bt = B                      # tiny batch: single block == full array dim
    # v7x: ensure >= 2 grid steps for large batches so both TensorCores run.
    if B >= 512:
        bt = min(bt, _round_up(pl.cdiv(B, 2), 16))

    grid = (pl.cdiv(B, bt),)

    out = pl.pallas_call(
        _critic_kernel,
        out_shape=jax.ShapeDtypeStruct((B, 1), jnp.float32),
        grid_spec=pltpu.PrefetchScalarGridSpec(
            num_scalar_prefetch=0,
            grid=grid,
            in_specs=[
                pl.BlockSpec((bt, D), lambda i: (i, 0)),     # state tile (f32)
                # Weights/biases: constant block index -> DMA'd once, resident
                # in VMEM across all grid steps.
                pl.BlockSpec((D, F1), lambda i: (0, 0)),     # W1 (f32)
                pl.BlockSpec((1, F1), lambda i: (0, 0)),     # b1 (f32)
                pl.BlockSpec((F1, F2), lambda i: (0, 0)),    # W2 (bf16)
                pl.BlockSpec((1, F2), lambda i: (0, 0)),     # b2 (f32)
                pl.BlockSpec((1, F2), lambda i: (0, 0)),     # W3 row (f32)
                pl.BlockSpec((1, 1), lambda i: (0, 0)),      # b3 (f32)
            ],
            out_specs=pl.BlockSpec((bt, 1), lambda i: (i, 0)),
        ),
        compiler_params=pltpu.CompilerParams(
            dimension_semantics=("parallel",),
        ),
    )(state, w1, b1, w2, b2, w3r, b3)

    return out


def init_params(key, input_dims, fc1_dims=256, fc2_dims=256):
    """Deterministic init mimicking torch.nn.Linear's U(-1/sqrt(fan_in), +)."""
    ks = jax.random.split(key, 6)

    def lin(kw, kb, fan_in, fan_out):
        bound = 1.0 / jnp.sqrt(fan_in)
        w = jax.random.uniform(kw, (fan_in, fan_out), jnp.float32, -bound, bound)
        b = jax.random.uniform(kb, (fan_out,), jnp.float32, -bound, bound)
        return w, b

    w1, b1 = lin(ks[0], ks[1], input_dims, fc1_dims)
    w2, b2 = lin(ks[2], ks[3], fc1_dims, fc2_dims)
    w3, b3 = lin(ks[4], ks[5], fc2_dims, 1)
    return (w1, b1, w2, b2, w3, b3)


if __name__ == "__main__":
    key = jax.random.PRNGKey(0)
    k_param, k_state = jax.random.split(key)

    # Small demo shapes; BATCH deliberately not a multiple of 16 so the ragged
    # last-tile path (non-divisible grid) is exercised.
    BATCH = 37
    INPUT_DIMS = 8          # corresponds to *input_dims in the torch module
    FC1, FC2 = 256, 256

    params = init_params(k_param, INPUT_DIMS, FC1, FC2)
    prepped = prepare_params(params)            # hoisted: once per param update
    state = jax.random.normal(k_state, (BATCH, INPUT_DIMS), jnp.float32)

    value = critic_forward(state, prepped)
    value = jax.block_until_ready(value)

    # Pure-JAX f32 reference; tolerance covers the bf16 layer-2 MXU operands
    # (f32 accumulation keeps the error far below this bound).
    w1, b1, w2, b2, w3, b3 = params
    ref = jnp.maximum(state @ w1 + b1, 0.0)
    ref = jnp.maximum(ref @ w2 + b2, 0.0)
    ref = ref @ w3 + b3

    assert value.shape == (BATCH, 1)
    max_err = float(jnp.max(jnp.abs(value - ref)))
    assert jnp.allclose(value, ref, atol=3e-2, rtol=3e-2), f"max abs err {max_err}"

    print("KERNEL_OK")
</pallas_src>

<mosaic_0001>
module attributes {stable_mosaic.version = 11 : i64} {
  func.func @_critic_kernel(%arg0: i32, %arg1: memref<32x8xf32, #tpu.memory_space<vmem>>, %arg2: memref<8x256xf32, #tpu.memory_space<vmem>>, %arg3: memref<1x256xf32, #tpu.memory_space<vmem>>, %arg4: memref<256x256xbf16, #tpu.memory_space<vmem>>, %arg5: memref<1x256xf32, #tpu.memory_space<vmem>>, %arg6: memref<1x256xf32, #tpu.memory_space<vmem>>, %arg7: memref<1x1xf32, #tpu.memory_space<vmem>>, %arg8: memref<32x1xf32, #tpu.memory_space<vmem>>) attributes {dimension_semantics = [#tpu.dimension_semantics<parallel>], iteration_bounds = array<i64: 2>, scalar_prefetch = 0 : i64, scratch_operands = 0 : i64, tpu.core_type = #tpu.core_type<tc>, window_params = [{transform_indices = @transform_0, window_bounds = array<i64: 32, 8>}, {pipeline_mode = #tpu.pipeline_mode<synchronous>, transform_indices = @transform_1, window_bounds = array<i64: 8, 256>}, {pipeline_mode = #tpu.pipeline_mode<synchronous>, transform_indices = @transform_2, window_bounds = array<i64: 1, 256>}, {pipeline_mode = #tpu.pipeline_mode<synchronous>, transform_indices = @transform_3, window_bounds = array<i64: 256, 256>}, {pipeline_mode = #tpu.pipeline_mode<synchronous>, transform_indices = @transform_4, window_bounds = array<i64: 1, 256>}, {pipeline_mode = #tpu.pipeline_mode<synchronous>, transform_indices = @transform_5, window_bounds = array<i64: 1, 256>}, {pipeline_mode = #tpu.pipeline_mode<synchronous>, transform_indices = @transform_6, window_bounds = array<i64: 1, 1>}, {transform_indices = @transform_7, window_bounds = array<i64: 32, 1>}]} {
    %c0 = arith.constant 0 : index
    %c0_0 = arith.constant 0 : index
    %0 = vector.load %arg1[%c0, %c0_0] : memref<32x8xf32, #tpu.memory_space<vmem>>, vector<32x8xf32>
    %c0_1 = arith.constant 0 : index
    %c0_2 = arith.constant 0 : index
    %1 = vector.load %arg2[%c0_1, %c0_2] : memref<8x256xf32, #tpu.memory_space<vmem>>, vector<8x256xf32>
    %cst = arith.constant dense<0.000000e+00> : vector<32x256xf32>
    %2 = tpu.matmul %0, %1, %cst {dimension_numbers = #tpu.dot_dimension_numbers<[1], [0], [0], [1], [0, 0, 1, 1], [], []>} : vector<32x8xf32>, vector<8x256xf32>, vector<32x256xf32> -> vector<32x256xf32>
    %c0_3 = arith.constant 0 : index
    %c0_4 = arith.constant 0 : index
    %3 = vector.load %arg3[%c0_3, %c0_4] : memref<1x256xf32, #tpu.memory_space<vmem>>, vector<1x256xf32>
    %4 = vector.broadcast %3 : vector<1x256xf32> to vector<32x256xf32>
    %5 = arith.addf %2, %4 : vector<32x256xf32>
    %cst_5 = arith.constant 0.000000e+00 : f32
    %6 = vector.broadcast %cst_5 : f32 to vector<32x256xf32>
    %7 = arith.maximumf %5, %6 : vector<32x256xf32>
    %8 = arith.truncf %7 : vector<32x256xf32> to vector<32x256xbf16>
    %c0_6 = arith.constant 0 : index
    %c0_7 = arith.constant 0 : index
    %9 = vector.load %arg4[%c0_6, %c0_7] : memref<256x256xbf16, #tpu.memory_space<vmem>>, vector<256x256xbf16>
    %cst_8 = arith.constant dense<0.000000e+00> : vector<32x256xf32>
    %10 = tpu.matmul %8, %9, %cst_8 {dimension_numbers = #tpu.dot_dimension_numbers<[1], [0], [0], [1], [0, 0, 1, 1], [], []>} : vector<32x256xbf16>, vector<256x256xbf16>, vector<32x256xf32> -> vector<32x256xf32>
    %c0_9 = arith.constant 0 : index
    %c0_10 = arith.constant 0 : index
    %11 = vector.load %arg5[%c0_9, %c0_10] : memref<1x256xf32, #tpu.memory_space<vmem>>, vector<1x256xf32>
    %12 = vector.broadcast %11 : vector<1x256xf32> to vector<32x256xf32>
    %13 = arith.addf %10, %12 : vector<32x256xf32>
    %cst_11 = arith.constant 0.000000e+00 : f32
    %14 = vector.broadcast %cst_11 : f32 to vector<32x256xf32>
    %15 = arith.maximumf %13, %14 : vector<32x256xf32>
    %c0_12 = arith.constant 0 : index
    %c0_13 = arith.constant 0 : index
    %16 = vector.load %arg6[%c0_12, %c0_13] : memref<1x256xf32, #tpu.memory_space<vmem>>, vector<1x256xf32>
    %17 = vector.broadcast %16 : vector<1x256xf32> to vector<32x256xf32>
    %18 = arith.mulf %15, %17 : vector<32x256xf32>
    %cst_14 = arith.constant dense<0.000000e+00> : vector<32xf32>
    %19 = vector.multi_reduction <add>, %18, %cst_14 [1] : vector<32x256xf32> to vector<32xf32>
    %20 = vector.shape_cast %19 : vector<32xf32> to vector<32x1xf32>
    %c0_15 = arith.constant 0 : index
    %c0_16 = arith.constant 0 : index
    %21 = vector.load %arg7[%c0_15, %c0_16] : memref<1x1xf32, #tpu.memory_space<vmem>>, vector<1x1xf32>
    %22 = vector.broadcast %21 : vector<1x1xf32> to vector<32x1xf32>
    %23 = arith.addf %20, %22 : vector<32x1xf32>
    %c0_17 = arith.constant 0 : index
    %c0_18 = arith.constant 0 : index
    %24 = vector.load %arg8[%c0_17, %c0_18] : memref<32x1xf32, #tpu.memory_space<vmem>>, vector<32x1xf32>
    tpu.vector_store %arg8[%c0_17, %c0_18], %23 {strides = array<i32>} : memref<32x1xf32, #tpu.memory_space<vmem>>, vector<32x1xf32>,
    return
  }
  func.func @transform_0(%arg0: i32) -> (i32, i32) {
    %c0_i32 = arith.constant 0 : i32
    %c0_i32_0 = arith.constant 0 : i32
    return %arg0, %c0_i32 : i32, i32
  }
  func.func @transform_1(%arg0: i32) -> (i32, i32) {
    %c0_i32 = arith.constant 0 : i32
    %c0_i32_0 = arith.constant 0 : i32
    %c0_i32_1 = arith.constant 0 : i32
    return %c0_i32, %c0_i32_0 : i32, i32
  }
  func.func @transform_2(%arg0: i32) -> (i32, i32) {
    %c0_i32 = arith.constant 0 : i32
    %c0_i32_0 = arith.constant 0 : i32
    %c0_i32_1 = arith.constant 0 : i32
    return %c0_i32, %c0_i32_0 : i32, i32
  }
  func.func @transform_3(%arg0: i32) -> (i32, i32) {
    %c0_i32 = arith.constant 0 : i32
    %c0_i32_0 = arith.constant 0 : i32
    %c0_i32_1 = arith.constant 0 : i32
    return %c0_i32, %c0_i32_0 : i32, i32
  }
  func.func @transform_4(%arg0: i32) -> (i32, i32) {
    %c0_i32 = arith.constant 0 : i32
    %c0_i32_0 = arith.constant 0 : i32
    %c0_i32_1 = arith.constant 0 : i32
    return %c0_i32, %c0_i32_0 : i32, i32
  }
  func.func @transform_5(%arg0: i32) -> (i32, i32) {
    %c0_i32 = arith.constant 0 : i32
    %c0_i32_0 = arith.constant 0 : i32
    %c0_i32_1 = arith.constant 0 : i32
    return %c0_i32, %c0_i32_0 : i32, i32
  }
  func.func @transform_6(%arg0: i32) -> (i32, i32) {
    %c0_i32 = arith.constant 0 : i32
    %c0_i32_0 = arith.constant 0 : i32
    %c0_i32_1 = arith.constant 0 : i32
    return %c0_i32, %c0_i32_0 : i32, i32
  }
  func.func @transform_7(%arg0: i32) -> (i32, i32) {
    %c0_i32 = arith.constant 0 : i32
    %c0_i32_0 = arith.constant 0 : i32
    return %arg0, %c0_i32 : i32, i32
  }
}

</mosaic_0001>

<bundles_post_ra>
// kernel: critic_forward.1
= control target key start
LH: loop header
LB: loop body
LE: loop exit
PB: predicated region body
PF: predicated region fallthrough
CT: control target
= control target key end

     0   :  { %s1576_s0 = inlined_call_operand.vmem [shape: f32[37,8], index: 0, kind: input, shape index: {}]   ;;  %s1577_s1 = inlined_call_operand.vmem [shape: f32[8,256], index: 1, kind: input, shape index: {}]   ;;  %s1578_s2 = inlined_call_operand.vmem [shape: f32[1,256], index: 2, kind: input, shape index: {}]   ;;  %s1579_s3 = inlined_call_operand.hbm [shape: bf16[256,256], index: 3, kind: input, shape index: {}]   ;;  %s1580_s4 = inlined_call_operand.vmem [shape: f32[1,256], index: 4, kind: input, shape index: {}]   ;;  %s1581_s5 = inlined_call_operand.vmem [shape: f32[1,256], index: 5, kind: input, shape index: {}]   ;;  %s1582_s6 = inlined_call_operand.<no memory space> [shape: f32[1,1], index: 6, kind: input, shape index: {}]   ;;  %s1583_s7 = inlined_call_operand.vmem [shape: f32[37,1], index: 7, kind: output, shape index: {}]  }
   0x1   :  { %v12_v0 = vstv %s1582_s6 }
   0x2   :  { %13 = vst [vmem:[#allocation2] sm:$0x1] %v12_v0 }
   0x3   :  { %14 = vsyncpa [#allocation4], 0  ;;  %s1416_s26 = smov 0   ;;  %s1418_s27 = smov 0  }
   0x4   :  { %s1420_s28 = smov 0  }
   0x5 LB: > { %s1429_s6 = sadd.s32 4294967295, %s1335_s28   ;;  %s1431_s29 = sadd.s32 1, %s1335_s28   ;;  %s1335_s28 = sphi %s1420_s28, %s1598_s28   ;;  %s1331_s27 = sphi %s1418_s27, %s1597_s27   ;;  %s1327_s26 = sphi %s1416_s26, %s1596_s26  }
   0x6   : > { %s176_s30 = ssub.s32 %s1335_s28, %s1431_s29  ;;  %s179_s8 = sadd.s32 1, %s1331_s27 }
   0x7   : > { %p177_p0 = scmp.eq.s32.totalorder %s176_s30, 0  ;;  %p189_p1 = scmp.ne.s32.totalorder %s1331_s27, %s1327_s26 }
   0x8   : > { %p190_p2 = scmp.eq.s32.totalorder %s1429_s6, 1  ;;  %p1002_p3 = scmp.ge.s32.totalorder %s1335_s28, 1 }
   0x9   : > { %s1439_s9 = scalar_select %p177_p0, %s1331_s27, %s179_s8  }
   0xa   : > { %p1441_p4 = por %p190_p2, %p189_p1  ;;  %p203_p5 = scmp.lt.s32.totalorder %s1335_s28, 3 }
   0xb   : > { %p1584_p6 = scmp.eq.s32.totalorder %s1429_s6, 0  ;;  %s1369_s12 = smov [#allocation3]  }
   0xc   : > { %s1586_s10 = scalar_select %p1441_p4, 1, 0 }
   0xd   : > { %p1446_p7 = pnand %p1002_p3, %p203_p5  ;;  %s221_s13 = sshll.u32 %s1369_s12, 4  ;;  %s222_s13 = int_to_ptr.vmem [resolvable:$true] %s221_s13 }
   0xe   : > { %s1249_s17 = scalar_lea.hbm %s1579_s3, 4096 }
   0xf   : > { %s1587_s11 = scalar_select %p1446_p7, 1, 0 }
  0x10   : > { %p1103_p8 = pneg %p1446_p7  ;;  %p1250_p10 = scmp.ne.s32.totalorder %s1579_s3, %s1249_s17 }
  0x11   : > { %p1256_p0 = scmp.lt.u32.totalorder %s1249_s17, %s1579_s3 }
  0x12   : > { %p1454_p9 = pnand %p1584_p6, %p1103_p8 }
  0x14   : > { %p1251_p11 = pneg %p1454_p9 }
  0x16   : > { %p1252_p12 = pnand %p1251_p11, %p1250_p10 }
  0x18   : > { %p1253_p13 = pneg %p1252_p12 }
  0x1a   : > { %p1258_p1 = pnand %p1256_p0, %p1253_p13 }
  0x1c   : > { %1261 = shalt.err (!%p1258_p1)
}
  0x1d   : > { %s1262_s22 = scalar_lea.vmem %s222_s13, 4096  ;;  %p1270_p8 = scmp.lt.s32.totalorder %s222_s13, %s222_s13 }
  0x1e   : > { %p1263_p2 = scmp.ne.s32.totalorder %s222_s13, %s1262_s22  ;;  %p1271_p6 = scmp.lt.s32.totalorder %s1262_s22, %s1262_s22 }
  0x20   : > { %p1265_p3 = pnand %p1263_p2, %p1251_p11  ;;  %p1272_p4 = por %p1271_p6, %p1270_p8 }
  0x22   : > { %p1266_p5 = pneg %p1265_p3 }
  0x24   : > { %p1273_p7 = pnand %p1272_p4, %p1266_p5 }
  0x26   : > { %1276 = shalt.err (!%p1273_p7)
}
  0x27   : > { %s1370_s23 = smov 128   ;;  %s1371_s24 = smov 8  }
  0x28   : > { %1106 = dma.hbm_to_vmem [thread:$0]  (!%p1454_p9), %s1579_s3, 4096, %s222_s13, [#allocation4], %s1370_s23, %s1370_s23, %s1371_s24  }
  0x29   : > { %p1589_p10 = scmp.ne.s32.totalorder %s1587_s11, 0 }
  0x2a   : > { %p1590_p12 = scmp.eq.s32.totalorder (!%p1589_p10), %s1429_s6, 0 }
  0x2b   : > { %263 = sbr.rel (%p1589_p10) target bundleno = 710 (0x2c6), region = 48 }
  0x32   : > { %1322 = dma.done.wait (%p1590_p12), [#allocation4], 4096   ;;  %p1591_p11 = pmov %p1590_p12 }
  0x33   : > { %s1481_s30 = sshll.u32 %s1429_s6, 2  ;;  %v1372_v1 = vmov 0.0   ;;  %v322_v2 = vld [vmem:[%s1577_s1 + $0x8] sm:$0xff]  ;;  %v321_v3 = vld [vmem:[%s1577_s1] sm:$0xff]  ;;  %vm335_vm0 = vcmask 64512   ;;  %v325_v40 = vlaneseq  ;;  %s295_s25 = sand.u32 1, %s1327_s26  }
  0x34   : > { %1324 = vsyncadd (%p1591_p11), [#allocation4], 4294963200  ;;  %412 = vmatprep.mubr.f32.mxu0 %v1372_v1  ;;  %p303_p4 = scmp.lt.s32.totalorder %s1481_s30, 4  ;;  %348 = vmatprep.subr.mxu0 %v322_v2  ;;  %v1201_v5 = vld [vmem:[#allocation3] ss:$8 sps:$4 sm:$0xff]   ;;  %s1007_s28 = sshll.u32 %s295_s25, 5 }
  0x35   : > { %349 = vmatpush1.msra.mxu0 %v321_v3  ;;  %v1203_v6 = vld [vmem:[#allocation3 + $0x4] ss:$8 sps:$4 sm:$0xff]   ;;  %v1206_v8 = vld [vmem:[#allocation3 + $0x14] ss:$8 sps:$4 sm:$0xff]   ;;  %v1204_v9 = vld [vmem:[#allocation3 + $0x10] ss:$8 sps:$4 sm:$0xff]  }
  0x36   : > { %s304_s8 = scalar_select %p303_p4, %s1481_s30, 4  ;;  %653 = vmatprep.subr.bf16.mxu0 %v1203_v6  ;;  %1067 = vmatprep.subr.bf16.mxu1 %v1203_v6  ;;  %v1209_v10 = vld [vmem:[#allocation3 + $0x24] ss:$8 sps:$4 sm:$0xff]   ;;  %v1207_v12 = vld [vmem:[#allocation3 + $0x20] ss:$8 sps:$4 sm:$0xff]   ;;  %v326_v41 = vshrl.u32 %v325_v40, 7 }
  0x37   : > { %1083 = vmatpush1.bf16.msra.mxu1 %v1201_v5  ;;  %v1212_v13 = vld [vmem:[#allocation3 + $0x34] ss:$8 sps:$4 sm:$0xff]   ;;  %v1210_v15 = vld [vmem:[#allocation3 + $0x30] ss:$8 sps:$4 sm:$0xff]   ;;  %v1215_v16 = vld [vmem:[#allocation3 + $0x44] ss:$8 sps:$4 sm:$0xff]  }
  0x38   : > { %s1009_s12 = sshll.u32 %s304_s8, 3  ;;  %1068 = vmatprep.subr.bf16.mxu1 %v1206_v8  ;;  %v1213_v17 = vld [vmem:[#allocation3 + $0x40] ss:$8 sps:$4 sm:$0xff]   ;;  %v1218_v18 = vld [vmem:[#allocation3 + $0x54] ss:$8 sps:$4 sm:$0xff]   ;;  %v327_v42 = vsub.s32 0, %v326_v41 }
  0x39   : > { %s1488_s11 = scalar_lea.vmem %s1576_s0, %s1009_s12  ;;  %v1216_v19 = vld [vmem:[#allocation3 + $0x50] ss:$8 sps:$4 sm:$0xff]   ;;  %v1221_v20 = vld [vmem:[#allocation3 + $0x64] ss:$8 sps:$4 sm:$0xff]   ;;  %v1219_v21 = vld [vmem:[#allocation3 + $0x60] ss:$8 sps:$4 sm:$0xff]  }
  0x3a   : > { %v317_v4 = vld [vmem:[%s1488_s11] sm:$0xff]  ;;  %v318_v7 = vld [vmem:[%s1488_s11 + $0x8] sm:$0xff]  ;;  %v319_v11 = vld [vmem:[%s1488_s11 + $0x10] sm:$0xff]  ;;  %v331_v44 = vsub.s32 1, %v326_v41  ;;  %vm757_vm1 = vcmask 7168   ;;  %s1514_s8 = scalar_lea.vmem [#allocation5], %s1007_s28  }
  0x3b   : > { %1010 = vmatmul.mubr.msk.f32.vlgmr.msra.gmra.mrb[0].mxu0 %vm335_vm0, %v317_v4  ;;  %1084 = vmatpush1.bf16.msra.mxu1 %v1204_v9  ;;  %v320_v14 = vld [vmem:[%s1488_s11 + $0x18] sm:$0xff]  ;;  %v1227_v24 = vld [vmem:[#allocation3 + $0x84] ss:$8 sps:$4 sm:$0xff]   ;;  %v1225_v25 = vld [vmem:[#allocation3 + $0x80] ss:$8 sps:$4 sm:$0xff]   ;;  %p1592_p6 = scmp.ne.s32.totalorder %s1586_s10, 0 }
  0x3c   : > { %418 = vmatprep.mubr.f32.mxu0 %v1372_v1  ;;  %654 = vmatpush1.bf16.msra.mxu0 %v1201_v5  ;;  %v1224_v22 = vld [vmem:[#allocation3 + $0x74] ss:$8 sps:$4 sm:$0xff]   ;;  %v1222_v23 = vld [vmem:[#allocation3 + $0x70] ss:$8 sps:$4 sm:$0xff]   ;;  %v1233_v28 = vld [vmem:[#allocation3 + $0xa4] ss:$8 sps:$4 sm:$0xff]  }
  0x3d   : > { %655 = vmatprep.subr.bf16.mxu0 %v1206_v8  ;;  %1069 = vmatprep.subr.bf16.mxu1 %v1209_v10  ;;  %v1230_v26 = vld [vmem:[#allocation3 + $0x94] ss:$8 sps:$4 sm:$0xff]   ;;  %v1228_v27 = vld [vmem:[#allocation3 + $0x90] ss:$8 sps:$4 sm:$0xff]   ;;  %v1231_v29 = vld [vmem:[#allocation3 + $0xa0] ss:$8 sps:$4 sm:$0xff]  }
  0x3e   : > { %v1236_v30 = vld [vmem:[#allocation3 + $0xb4] ss:$8 sps:$4 sm:$0xff]   ;;  %v1234_v31 = vld [vmem:[#allocation3 + $0xb0] ss:$8 sps:$4 sm:$0xff]   ;;  %v1239_v32 = vld [vmem:[#allocation3 + $0xc4] ss:$8 sps:$4 sm:$0xff]  }
  0x3f   : > { %1011 = vmatmul.mubr.msk.f32.gmra.mrb[2].mxu0 %vm335_vm0, %v318_v7  ;;  %1085 = vmatpush1.bf16.msra.mxu1 %v1207_v12  ;;  %v1237_v33 = vld [vmem:[#allocation3 + $0xc0] ss:$8 sps:$4 sm:$0xff]   ;;  %v1242_v34 = vld [vmem:[#allocation3 + $0xd4] ss:$8 sps:$4 sm:$0xff]   ;;  %v1240_v35 = vld [vmem:[#allocation3 + $0xd0] ss:$8 sps:$4 sm:$0xff]  }
  0x40   : > { %424 = vmatprep.mubr.f32.mxu0 %v1372_v1  ;;  %656 = vmatpush1.bf16.msra.mxu0 %v1204_v9  ;;  %v1245_v36 = vld [vmem:[#allocation3 + $0xe4] ss:$8 sps:$4 sm:$0xff]   ;;  %v1243_v37 = vld [vmem:[#allocation3 + $0xe0] ss:$8 sps:$4 sm:$0xff]   ;;  %v1248_v38 = vld [vmem:[#allocation3 + $0xf4] ss:$8 sps:$4 sm:$0xff]  }
  0x41   : > { %657 = vmatprep.subr.bf16.mxu0 %v1209_v10  ;;  %1070 = vmatprep.subr.bf16.mxu1 %v1212_v13  ;;  %v1246_v39 = vld [vmem:[#allocation3 + $0xf0] ss:$8 sps:$4 sm:$0xff]   ;;  %v323_v43 = vld [vmem:[%s1578_s2] sm:$0x3]  ;;  %s770_s26 = ssub.s32 (%p1592_p6), 5, %s1481_s30  ;;  %s1064_s12 = sshll.u32 (%p1592_p6), %s1429_s6, 5 }
  0x42   : > { %v328_v45 = vrot.slane %v323_v43, %v327_v42  ;;  %v332_v47 = vrot.slane %v323_v43, %v331_v44  ;;  %p771_p7 = scmp.lt.s32.totalorder (%p1592_p6), %s770_s26, 4  ;;  %s1527_s11 = scalar_lea.vmem (%p1592_p6), %s1583_s7, %s1064_s12  }
  0x43   : > { %1012 = vmatmul.mubr.msk.f32.gmra.mrb[4].mxu0 %vm335_vm0, %v319_v11  ;;  %1086 = vmatpush1.bf16.msra.mxu1 %v1210_v15  ;;  %v481_v11 = vld [vmem:[%s1580_s4] sm:$0x3] }
  0x44   : > { %430 = vmatprep.mubr.f32.mxu0 %v1372_v1  ;;  %658 = vmatpush1.bf16.msra.mxu0 %v1207_v12  ;;  %v486_v12 = vrot.slane %v481_v11, %v327_v42 }
  0x45   : > { %659 = vmatprep.subr.bf16.mxu0 %v1212_v13  ;;  %1071 = vmatprep.subr.bf16.mxu1 %v1215_v16  ;;  %v490_v13 = vrot.slane %v481_v11, %v331_v44 }
  0x47   : > { %1013 = vmatmul.mubr.msk.f32.gmra.mrb[6].mxu0 %vm335_vm0, %v320_v14  ;;  %1087 = vmatpush1.bf16.msra.mxu1 %v1213_v17  ;;  %v714_v14 = vld [vmem:[%s1581_s5] sm:$0x3] }
  0x48   : > { %660 = vmatpush1.bf16.msra.mxu0 %v1210_v15  ;;  %1072 = vmatprep.subr.bf16.mxu1 %v1218_v18 }
  0x49   : > { %661 = vmatprep.subr.bf16.mxu0 %v1215_v16 }
  0x4b   : > { %1088 = vmatpush1.bf16.msra.mxu1 %v1216_v19 }
  0x4c   : > { %662 = vmatpush1.bf16.msra.mxu0 %v1213_v17  ;;  %1073 = vmatprep.subr.bf16.mxu1 %v1221_v20 }
  0x4d   : > { %663 = vmatprep.subr.bf16.mxu0 %v1218_v18  ;;  %v719_v18 = vrot.slane %v714_v14, %v327_v42 }
  0x4f   : > { %1089 = vmatpush1.bf16.msra.mxu1 %v1219_v21 }
  0x50   : > { %664 = vmatpush1.bf16.msra.mxu0 %v1216_v19  ;;  %1074 = vmatprep.subr.bf16.mxu1 %v1224_v22 }
  0x51   : > { %665 = vmatprep.subr.bf16.mxu0 %v1221_v20 }
  0x53   : > { %1090 = vmatpush1.bf16.msra.mxu1 %v1222_v23 }
  0x54   : > { %666 = vmatpush1.bf16.msra.mxu0 %v1219_v21  ;;  %1075 = vmatprep.subr.bf16.mxu1 %v1227_v24  ;;  %v723_v21 = vrot.slane %v714_v14, %v331_v44 }
  0x55   : > { %667 = vmatprep.subr.bf16.mxu0 %v1224_v22 }
  0x57   : > { %1091 = vmatpush1.bf16.msra.mxu1 %v1225_v25 }
  0x58   : > { %668 = vmatpush1.bf16.msra.mxu0 %v1222_v23  ;;  %1076 = vmatprep.subr.bf16.mxu1 %v1230_v26 }
  0x59   : > { %669 = vmatprep.subr.bf16.mxu0 %v1227_v24 }
  0x5b   : > { %1092 = vmatpush1.bf16.msra.mxu1 %v1228_v27 }
  0x5c   : > { %670 = vmatpush1.bf16.msra.mxu0 %v1225_v25  ;;  %1077 = vmatprep.subr.bf16.mxu1 %v1233_v28 }
  0x5d   : > { %671 = vmatprep.subr.bf16.mxu0 %v1230_v26 }
  0x5f   : > { %1093 = vmatpush1.bf16.msra.mxu1 %v1231_v29 }
  0x60   : > { %672 = vmatpush1.bf16.msra.mxu0 %v1228_v27  ;;  %1078 = vmatprep.subr.bf16.mxu1 %v1236_v30 }
  0x61   : > { %673 = vmatprep.subr.bf16.mxu0 %v1233_v28 }
  0x63   : > { %1094 = vmatpush1.bf16.msra.mxu1 %v1234_v31 }
  0x64   : > { %674 = vmatpush1.bf16.msra.mxu0 %v1231_v29  ;;  %1079 = vmatprep.subr.bf16.mxu1 %v1239_v32 }
  0x65   : > { %675 = vmatprep.subr.bf16.mxu0 %v1236_v30 }
  0x67   : > { %1095 = vmatpush1.bf16.msra.mxu1 %v1237_v33 }
  0x68   : > { %676 = vmatpush1.bf16.msra.mxu0 %v1234_v31  ;;  %1080 = vmatprep.subr.bf16.mxu1 %v1242_v34 }
  0x69   : > { %677 = vmatprep.subr.bf16.mxu0 %v1239_v32 }
  0x6b   : > { %1096 = vmatpush1.bf16.msra.mxu1 %v1240_v35 }
  0x6c   : > { %678 = vmatpush1.bf16.msra.mxu0 %v1237_v33  ;;  %1081 = vmatprep.subr.bf16.mxu1 %v1245_v36 }
  0x6d   : > { %679 = vmatprep.subr.bf16.mxu0 %v1242_v34 }
  0x6f   : > { %1097 = vmatpush1.bf16.msra.mxu1 %v1243_v37 }
  0x70   : > { %680 = vmatpush1.bf16.msra.mxu0 %v1240_v35  ;;  %1082 = vmatprep.subr.bf16.mxu1 %v1248_v38 }
  0x71   : > { %681 = vmatprep.subr.bf16.mxu0 %v1245_v36 }
  0x73   : > { %1098 = vmatpush1.bf16.msra.mxu1 %v1246_v39 }
  0x74   : > { %682 = vmatpush1.bf16.msra.mxu0 %v1243_v37 }
  0x75   : > { %683 = vmatprep.subr.bf16.mxu0 %v1248_v38 }
  0x78   : > { %684 = vmatpush1.bf16.msra.mxu0 %v1246_v39 }
 0x10e   : > { %v414_v46 = vpop.f32.mrb[0].mxu0 }
 0x10f   : > { %v416_v48 = vpop.f32.mrb[1].mxu0  ;;  %v415_v49 = vadd.f32 %v414_v46, %v328_v45 }
 0x110   : > { %v417_v50 = vadd.f32 %v416_v48, %v332_v47 }
 0x111   : > { %v437_v55 = vmax.f32 %v415_v49, 0.0 }
 0x112   : > { %v420_v51 = vpop.f32.mrb[2].mxu0  ;;  %v438_v57 = vmax.f32 %v417_v50, 0.0 }
 0x113   : > { %v421_v52 = vadd.f32 %v420_v51, %v328_v45  ;;  %v422_v53 = vpop.f32.mrb[3].mxu0 }
 0x114   : > { %v423_v54 = vadd.f32 %v422_v53, %v332_v47  ;;  %v1046_v53 = vld [vmem:[#allocation2] ss:$0 sm:$0xff] }
 0x115   : > { %v439_v56 = vmax.f32 %v421_v52, 0.0 }
 0x116   : > { %v440_v58 = vmax.f32 %v423_v54, 0.0  ;;  %v426_v59 = vpop.f32.mrb[4].mxu0 }
 0x117   : > { %v445_v60 = vpack.c.bf16 %v439_v56, %v437_v55  ;;  %v428_v61 = vpop.f32.mrb[5].mxu0  ;;  %v427_v63 = vadd.f32 %v426_v59, %v328_v45 }
 0x118   : > { %v446_v62 = vpack.c.bf16 %v440_v58, %v438_v57  ;;  %v429_v0 = vadd.f32 %v428_v61, %v332_v47 }
 0x119   : > { %v441_v5 = vmax.f32 %v427_v63, 0.0 }
 0x11a   : > { %v432_v1 = vpop.f32.mrb[6].mxu0  ;;  %685 = vmatprep.mubr.bf16.mxu0 %v446_v62  ;;  %v442_v7 = vmax.f32 %v429_v0, 0.0 }
 0x11b   : > { %v433_v2 = vadd.f32 %v432_v1, %v328_v45  ;;  %v434_v3 = vpop.f32.mrb[7].mxu0  ;;  %686 = vmatmul.mubr.bf16.vlgmr.msra.gmra.mrb[8].mxu0 %v445_v60 }
 0x11c   : > { %v435_v4 = vadd.f32 %v434_v3, %v332_v47 }
 0x11d   : > { %v443_v6 = vmax.f32 %v433_v2, 0.0 }
 0x11e   : > { %v444_v8 = vmax.f32 %v435_v4, 0.0 }
 0x11f   : > { %v447_v9 = vpack.c.bf16 %v443_v6, %v441_v5 }
 0x120   : > { %v448_v10 = vpack.c.bf16 %v444_v8, %v442_v7 }
 0x122   : > { %695 = vmatprep.mubr.bf16.mxu1 %v448_v10 }
 0x123   : > { %696 = vmatmul.mubr.bf16.vlgmr.msra.gmra.mrb[0].mxu1 %v447_v9 }
 0x1ee   : > { %v687_v15 = vpop.f32.mrb[8].mxu0 }
 0x1ef   : > { %v688_v16 = vadd.f32 %v687_v15, %v486_v12  ;;  %v689_v17 = vpop.f32.mrb[9].mxu0 }
 0x1f0   : > { %v690_v19 = vadd.f32 %v689_v17, %v490_v13  ;;  %v691_v20 = vpop.f32.mrb[10].mxu0 }
 0x1f1   : > { %v706_v22 = vmax.f32 %v688_v16, 0.0  ;;  %v692_v23 = vadd.f32 %v691_v20, %v486_v12  ;;  %v693_v24 = vpop.f32.mrb[11].mxu0 }
 0x1f2   : > { %v707_v25 = vmax.f32 %v690_v19, 0.0  ;;  %v694_v26 = vadd.f32 %v693_v24, %v490_v13 }
 0x1f3   : > { %v708_v27 = vmax.f32 %v692_v23, 0.0  ;;  %v726_v28 = vmul.f32 %v719_v18, %v706_v22 }
 0x1f4   : > { %v709_v29 = vmax.f32 %v694_v26, 0.0  ;;  %v727_v30 = vmul.f32 %v723_v21, %v707_v25 }
 0x1f5   : > { %v728_v31 = vmul.f32 %v719_v18, %v708_v27 }
 0x1f6   : > { %v729_v32 = vmul.f32 %v723_v21, %v709_v29  ;;  %v697_v33 = vpop.f32.mrb[0].mxu1  ;;  %v734_v34 = vadd.f32 %v727_v30, %v726_v28 }
 0x1f7   : > { %v698_v35 = vadd.f32 %v697_v33, %v486_v12  ;;  %v699_v36 = vpop.f32.mrb[1].mxu1 }
 0x1f8   : > { %v700_v37 = vadd.f32 %v699_v36, %v490_v13  ;;  %v701_v38 = vpop.f32.mrb[2].mxu1  ;;  %735 = vadd.xlane.f32.xlu0 %v734_v34  ;;  %v737_v39 = vadd.f32 %v729_v32, %v728_v31 }
 0x1f9   : > { %v710_v40 = vmax.f32 %v698_v35, 0.0  ;;  %v702_v41 = vadd.f32 %v701_v38, %v486_v12  ;;  %v703_v42 = vpop.f32.mrb[3].mxu1 }
 0x1fa   : > { %v711_v43 = vmax.f32 %v700_v37, 0.0  ;;  %v704_v44 = vadd.f32 %v703_v42, %v490_v13 }
 0x1fb   : > { %v712_v45 = vmax.f32 %v702_v41, 0.0  ;;  %v730_v46 = vmul.f32 %v719_v18, %v710_v40 }
 0x1fc   : > { %v713_v47 = vmax.f32 %v704_v44, 0.0  ;;  %738 = vadd.xlane.f32.xlu0 %v737_v39  ;;  %v731_v48 = vmul.f32 %v723_v21, %v711_v43 }
 0x1fd   : > { %v732_v49 = vmul.f32 %v719_v18, %v712_v45 }
 0x1fe   : > { %v733_v50 = vmul.f32 %v723_v21, %v713_v47  ;;  %v740_v51 = vadd.f32 %v731_v48, %v730_v46 }
 0x200   : > { %741 = vadd.xlane.f32.xlu1 %v740_v51  ;;  %v743_v52 = vadd.f32 %v733_v50, %v732_v49 }
 0x204   : > { %744 = vadd.xlane.f32.xlu1 %v743_v52 }
 0x285   : > { %v736_v54 = vpop.xlane.xlu0 %735 }
 0x286   : > { %v753_v55 = vadd.f32 %v1046_v53, %v736_v54 }
 0x288   : > { %758 = vst.msk [vmem:[%s1514_s8] sm:$0xff] %vm757_vm1, %v753_v55 }
 0x289   : > { %v739_v56 = vpop.xlane.xlu0 %738 }
 0x28a   : > { %v754_v57 = vadd.f32 %v1046_v53, %v739_v56 }
 0x28c   : > { %759 = vst.msk [vmem:[%s1514_s8 + $0x8] sm:$0xff] %vm757_vm1, %v754_v57 }
 0x28d   : > { %v742_v58 = vpop.xlane.xlu1 %741 }
 0x28e   : > { %v755_v59 = vadd.f32 %v1046_v53, %v742_v58  ;;  %768 = sbr.rel (!%p1592_p6) target bundleno = 710 (0x2c6), region = 56 }
 0x290   : > { %760 = vst.msk [vmem:[%s1514_s8 + $0x10] sm:$0xff] %vm757_vm1, %v755_v59 }
 0x291   : > { %v745_v60 = vpop.xlane.xlu1 %744 }
 0x292   : > { %v756_v61 = vadd.f32 %v1046_v53, %v745_v60 }
 0x294   : > { %761 = vst.msk [vmem:[%s1514_s8 + $0x18] sm:$0xff] %vm757_vm1, %v756_v61 }
 0x295   : > { %s1600_s26 = smov (!%p771_p7, %s770_s26), 4 }
 0x296   : > { %s1049_s15 = sshll.u32 %s1600_s26, 7 }
 0x297   : > { %p1052_p9 = scmp.eq.s32.totalorder %s1049_s15, 0 }
 0x298   : > { %s1533_s16 = sshrl.u32 (!%p1052_p9), %s1600_s26, 2 }
 0x299   : > { %779 = sbr.rel (%p1052_p9) target bundleno = 710 (0x2c6), region = 60  ;;  %p1053_p13 = scmp.le.s32.totalorder (!%p1052_p9), %s1533_s16, 0 }
 0x2a0   : > { %948 = sbr.rel (%p1053_p13) target bundleno = 689 (0x2b1), region = 137  ;;  %s1593_s6 = smov (!%p1053_p13), %s1527_s11 }
 0x2a1   : > { %s1594_s10 = smov (!%p1053_p13), %s1514_s8  ;;  %s1542_s30 = smov (!%p1053_p13), 0  }
 0x2a2   : > { %s1349_s17 = smov (!%p1053_p13), 0  }
 0x2a7 LB: >> { %v847_v62 = vld [vmem:[%s1343_s10] sm:$0xff]  ;;  %v849_v63 = vld [vmem:[%s1343_s10 + $0x8] sm:$0xff]  ;;  %v851_v0 = vld [vmem:[%s1343_s10 + $0x10] sm:$0xff]  ;;  %s855_s18 = sadd.s32 1, %s1347_s30  ;;  %s841_s17 = sadd.s32 1, %s1351_s17   ;;  %s1351_s17 = sphi %s1349_s17, %s841_s17   ;;  %s1347_s30 = sphi %s1542_s30, %s1595_s30   ;;  %s1343_s10 = sphi %s1594_s10, %s860_s10   ;;  %s1339_s6 = sphi %s1593_s6, %s861_s6  }
 0x2a8   : >> { %848 = vst [vmem:[%s1339_s6] sm:$0xff] %v847_v62  ;;  %850 = vst [vmem:[%s1339_s6 + $0x8] sm:$0xff] %v849_v63  ;;  %v853_v1 = vld [vmem:[%s1343_s10 + $0x18] sm:$0xff]  ;;  %p856_p0 = scmp.ge.s32.totalorder %s855_s18, %s1533_s16  ;;  %p840_p1 = scmp.ge.s32.totalorder %s841_s17, %s1533_s16 }
 0x2a9   : >> { %852 = vst [vmem:[%s1339_s6 + $0x10] sm:$0xff] %v851_v0  ;;  %854 = vst [vmem:[%s1339_s6 + $0x18] sm:$0xff] %v853_v1 }
 0x2aa   : >> { %s1602_s18 = smov (%p856_p0, %s855_s18), 0  ;;  %843 = sbr.rel (!%p840_p1) target bundleno = 679 (0x2a7), region = 143 }
 0x2ab   : >> { %s1054_s19 = sshll.u32 %s1602_s18, 5  ;;  %s1595_s30 = smov %s1602_s18 }
 0x2ac   : >> { %s860_s10 = scalar_lea.vmem %s1514_s8, %s1054_s19 [#allocation5]   ;;  %s861_s6 = scalar_lea.vmem %s1527_s11, %s1054_s19  }
 0x2b1 PF: > { %s1558_s20 = sand.u32 3, %s1600_s26   ;;  %s1065_s21 = sshll.u32 %s1533_s16, 5 }
 0x2b2   : > { %s866_s22 = scalar_lea.vmem %s1514_s8, %s1065_s21 [#allocation5]   ;;  %s868_s23 = scalar_lea.vmem %s1527_s11, %s1065_s21  }
 0x2b3   : > { %p1059_p2 = scmp.le.s32.totalorder %s1558_s20, 0 }
 0x2b4   : > { %s1353_s24 = smov (!%p1059_p2), %s868_s23   ;;  %s1357_s25 = smov (!%p1059_p2), %s866_s22  }
 0x2b5   : > { %962 = sbr.rel (%p1059_p2) target bundleno = 710 (0x2c6), region = 148  ;;  %s1361_s28 = smov (!%p1059_p2), 0  }
 0x2b6   : > { %s1365_s12 = smov (!%p1059_p2), 0  }
 0x2bc LB: >> { %v878_v2 = vld [vmem:[%s1359_s25] sm:$0xff]  ;;  %s880_s26 = sadd.s32 1, %s1363_s28  ;;  %s872_s12 = sadd.s32 1, %s1367_s12   ;;  %s1367_s12 = sphi %s1365_s12, %s872_s12   ;;  %s1363_s28 = sphi %s1361_s28, %s1362_s28   ;;  %s1359_s25 = sphi %s1357_s25, %s885_s25   ;;  %s1355_s24 = sphi %s1353_s24, %s886_s24  }
 0x2bd   : >> { %879 = vst [vmem:[%s1355_s24] sm:$0xff] %v878_v2  ;;  %p881_p3 = scmp.ge.s32.totalorder %s880_s26, %s1558_s20  ;;  %p871_p5 = scmp.ge.s32.totalorder %s872_s12, %s1558_s20 }
 0x2bf   : >> { %s1604_s26 = smov (%p881_p3, %s880_s26), 0  ;;  %874 = sbr.rel (!%p871_p5) target bundleno = 700 (0x2bc), region = 154 }
 0x2c0   : >> { %s1060_s8 = sshll.u32 %s1604_s26, 3  ;;  %s1362_s28 = smov %s1604_s26  }
 0x2c1   : >> { %s885_s25 = scalar_lea.vmem %s866_s22, %s1060_s8 [#allocation5]   ;;  %s886_s24 = scalar_lea.vmem %s868_s23, %s1060_s8  }
 0x2c6 PF: > { %p17_p8 = scmp.ge.s32.totalorder %s1431_s29, 4   ;;  %s1596_s26 = smov %s1331_s27 }
 0x2c7   : > { %s1597_s27 = smov %s1439_s9  ;;  %s1598_s28 = smov %s1431_s29 }
 0x2c8   :  { %19 = sbr.rel (!%p17_p8) target bundleno = 5 (0x5), region = 165 }
 0x2cf   :  { %902 = vsyncpa [#allocation4], 1 }
 0x2d0   :  { %904 = vsyncpa [#allocation4 + $0x1], 1 }

</bundles_post_ra>
